<compile_context>
chip_gen: v6e
topology: v6e:2x2x1
jax: 0.10.0
libtpu: 0.0.40
codegen_flags: <defaults>
</compile_context>

<pallas_src>
import math

import jax
import jax.numpy as jnp
from jax.experimental import pallas as pl
from jax.experimental.pallas import tpu as pltpu


def _round_up(a: int, b: int) -> int:
    return ((a + b - 1) // b) * b


def _cdiv(a: int, b: int) -> int:
    return (a + b - 1) // b


def _sdw_conv_kernel(x_ref, halo_ref, w_ref, o_ref):
    """One (TS, TL) block of the causal depth-wise convolution.

    x_ref    : (TS, TL)      current sequence tile
    halo_ref : (1, Ha, TL)   last K-1 rows of the PREVIOUS tile (zeros for s==0)
    w_ref    : (K, TL)       lane-tiled weights
    o_ref    : (TS, TL)      output tile
    """
    K = w_ref.shape[0]
    TS = x_ref.shape[0]
    H = K - 1  # rows of this tile that need the halo

    w = w_ref[...]

    # Bulk rows [H, TS): every shifted term is a static slice of x_ref itself
    # (no staging copy, no scratch).  Statically unrolled, K is tiny.
    acc = x_ref[H:TS, :] * w[0:1, :]
    for i in range(1, K):
        acc = acc + x_ref[H - i:TS - i, :] * w[i:i + 1, :]
    o_ref[H:TS, :] = acc.astype(o_ref.dtype)

    if H > 0:
        # First H rows: sources span the previous tile's tail (halo) and this
        # tile's first H rows -> a tiny (2H, TL) working set.
        head_src = jnp.concatenate([halo_ref[0], x_ref[0:H, :]], axis=0)
        hacc = head_src[H:2 * H, :] * w[0:1, :]
        for i in range(1, K):
            hacc = hacc + head_src[H - i:2 * H - i, :] * w[i:i + 1, :]
        o_ref[0:H, :] = hacc.astype(o_ref.dtype)


def spatial_depthwise_conv(x, kernels, *, target_tile_bytes=None, max_lane_tile=2048):
    """x: [seq_len, batch, heads, d_k]; kernels: [kernel_size, d_k]."""
    S, B, NH, Dk = x.shape
    K = kernels.shape[0]
    L = B * NH * Dk
    Hc = K - 1                                  # causal halo rows
    itemsize = jnp.dtype(x.dtype).itemsize

    # ---- VMEM budget: derive from hardware (64 MiB/TC on v7x, 128 MiB on v5e/v6e).
    try:
        vmem_cap = int(pltpu.get_tpu_info().vmem_capacity_bytes)
    except Exception:
        vmem_cap = 64 * 1024 * 1024             # conservative fallback
    vmem_limit = min(vmem_cap * 3 // 4, 96 * 1024 * 1024)
    if target_tile_bytes is None:
        # ~2x(in) + 2x(out) double-buffered tiles + halo/weights must fit.
        target_tile_bytes = max(512 * 1024, min(16 * 1024 * 1024, vmem_limit // 6))

    # ---- Lane tiling: pick the tile COUNT first, then balance, so per-tile
    #      padding stays < 128 lanes (padding is wasted HBM bandwidth).
    lanes = _round_up(L, 128) // 128
    nL = _cdiv(lanes, max(max_lane_tile // 128, 1))
    TL = _cdiv(lanes, nL) * 128
    L_pad = nL * TL

    # ---- Sequence tiling: fill ~target_tile_bytes per block, balanced the same way.
    S8 = _round_up(S, 8)
    rows_budget = max(8, (target_tile_bytes // (TL * itemsize)) // 8 * 8)
    nS = _cdiv(S8 // 8, max(rows_budget // 8, 1))
    TS = _cdiv(S8 // 8, nS) * 8
    TS = max(TS, _round_up(max(Hc, 1), 8))      # halo must fit inside one tile
    nS = _cdiv(S8, TS)
    S_pad = nS * TS

    # ---- [S, B, H, d_k] -> [S, L]: trailing-dim collapse, no data movement.
    x2 = x.reshape(S, L)
    if (S_pad, L_pad) != (S, L):
        x2 = jnp.pad(x2, ((0, S_pad - S), (0, L_pad - L)))

    # Per-d_k weights replicated across (batch, heads) -> [K, L_pad] (tiny).
    w2 = jnp.tile(kernels.astype(x.dtype), (1, B * NH))
    if L_pad != L:
        w2 = jnp.pad(w2, ((0, 0), (0, L_pad - L)))

    # ---- HBM-sourced causal halo: tile s gets the last Hc rows of tile s-1
    #      (zeros for s == 0).  Removes any cross-iteration carry, so both grid
    #      axes are independent ("parallel") -> full megacore utilization.
    Ha = max(Hc, 1)
    x3 = x2.reshape(nS, TS, L_pad)
    if Hc > 0:
        halo = jnp.concatenate(
            [jnp.zeros((1, Ha, L_pad), x.dtype), x3[:-1, TS - Hc:, :]], axis=0)
    else:
        halo = jnp.zeros((nS, Ha, L_pad), x.dtype)

    cost = pl.CostEstimate(
        flops=2 * K * S * L,
        transcendentals=0,
        bytes_accessed=(2 * S_pad * L_pad + nS * Ha * L_pad + K * L_pad) * itemsize,
    )

    out = pl.pallas_call(
        _sdw_conv_kernel,
        out_shape=jax.ShapeDtypeStruct((S_pad, L_pad), x.dtype),
        grid_spec=pltpu.PrefetchScalarGridSpec(
            num_scalar_prefetch=0,
            grid=(nL, nS),
            in_specs=[
                pl.BlockSpec((TS, TL), lambda l, s: (s, l)),
                pl.BlockSpec((1, Ha, TL), lambda l, s: (s, 0, l)),
                pl.BlockSpec((K, TL), lambda l, s: (0, l)),
            ],
            out_specs=pl.BlockSpec((TS, TL), lambda l, s: (s, l)),
        ),
        compiler_params=pltpu.CompilerParams(
            dimension_semantics=("parallel", "parallel"),
            vmem_limit_bytes=int(vmem_limit),
        ),
        cost_estimate=cost,
    )(x2, halo, w2)

    out = out[:S, :L]
    return out.reshape(S, B, NH, Dk)


def _reference(x, kernels):
    """Pure-JAX reference mirroring the PyTorch loop."""
    res = x * kernels[0].reshape(1, 1, 1, -1)
    for i in range(1, kernels.shape[0]):
        res = res.at[i:].add(x[:-i] * kernels[i].reshape(1, 1, 1, -1))
    return res


if __name__ == "__main__":
    # Small, module-consistent shapes: x is [seq_len, batch, heads, d_k]
    seq_len, batch, heads, d_k = 8, 2, 4, 32
    kernel_size = 3

    key = jax.random.PRNGKey(0)
    kx, kw, kx2, kw2 = jax.random.split(key, 4)

    x = jax.random.normal(kx, (seq_len, batch, heads, d_k), dtype=jnp.float32)

    # deterministic init matching nn.Parameter(torch.zeros(K, d_k).uniform_(-rng, rng))
    rng = 1.0 / math.sqrt(kernel_size)
    kernels = jax.random.uniform(
        kw, (kernel_size, d_k), minval=-rng, maxval=rng, dtype=jnp.float32
    )

    out = spatial_depthwise_conv(x, kernels)
    out = jax.block_until_ready(out)

    ref = _reference(x, kernels)
    assert out.shape == (seq_len, batch, heads, d_k)
    assert jnp.allclose(out, ref, atol=1e-5, rtol=1e-5), "mismatch vs reference"

    # Second check: force multiple S-tiles and L-tiles to exercise the
    # HBM-sourced halo path and lane tiling.
    x_big = jax.random.normal(kx2, (24, batch, heads, d_k), dtype=jnp.float32)
    out_big = spatial_depthwise_conv(
        x_big, kernels, target_tile_bytes=4 * 1024, max_lane_tile=128
    )
    out_big = jax.block_until_ready(out_big)
    assert jnp.allclose(out_big, _reference(x_big, kernels), atol=1e-5, rtol=1e-5), \
        "mismatch vs reference (tiled path)"

    # Third check: larger kernel_size (wider halo) on the tiled config.
    kernels4 = jax.random.uniform(
        kw2, (4, d_k), minval=-0.5, maxval=0.5, dtype=jnp.float32
    )
    out_k4 = spatial_depthwise_conv(
        x_big, kernels4, target_tile_bytes=4 * 1024, max_lane_tile=128
    )
    out_k4 = jax.block_until_ready(out_k4)
    assert jnp.allclose(out_k4, _reference(x_big, kernels4), atol=1e-5, rtol=1e-5), \
        "mismatch vs reference (K=4 tiled path)"

    print("KERNEL_OK")
</pallas_src>

<mosaic_0001>
module attributes {stable_mosaic.version = 11 : i64} {
  func.func @_sdw_conv_kernel(%arg0: i32, %arg1: i32, %arg2: memref<8x256xf32, #tpu.memory_space<vmem>>, %arg3: memref<1x2x256xf32, #tpu.memory_space<vmem>>, %arg4: memref<3x256xf32, #tpu.memory_space<vmem>>, %arg5: memref<8x256xf32, #tpu.memory_space<vmem>>) attributes {dimension_semantics = [#tpu.dimension_semantics<parallel>, #tpu.dimension_semantics<parallel>], iteration_bounds = array<i64: 1, 1>, scalar_prefetch = 0 : i64, scratch_operands = 0 : i64, tpu.core_type = #tpu.core_type<tc>, window_params = [{transform_indices = @transform_0, window_bounds = array<i64: 8, 256>}, {transform_indices = @transform_1, window_bounds = array<i64: 1, 2, 256>}, {transform_indices = @transform_2, window_bounds = array<i64: 3, 256>}, {transform_indices = @transform_3, window_bounds = array<i64: 8, 256>}]} {
    %c0 = arith.constant 0 : index
    %c0_0 = arith.constant 0 : index
    %0 = vector.load %arg4[%c0, %c0_0] : memref<3x256xf32, #tpu.memory_space<vmem>>, vector<3x256xf32>
    %c2 = arith.constant 2 : index
    %c0_1 = arith.constant 0 : index
    %1 = vector.load %arg2[%c2, %c0_1] : memref<8x256xf32, #tpu.memory_space<vmem>>, vector<6x256xf32>
    %2 = vector.extract_strided_slice %0 {offsets = [0, 0], sizes = [1, 256], strides = [1, 1]} : vector<3x256xf32> to vector<1x256xf32>
    %3 = vector.broadcast %2 : vector<1x256xf32> to vector<6x256xf32>
    %4 = arith.mulf %1, %3 : vector<6x256xf32>
    %c1 = arith.constant 1 : index
    %c0_2 = arith.constant 0 : index
    %5 = vector.load %arg2[%c1, %c0_2] : memref<8x256xf32, #tpu.memory_space<vmem>>, vector<6x256xf32>
    %6 = vector.extract_strided_slice %0 {offsets = [1, 0], sizes = [1, 256], strides = [1, 1]} : vector<3x256xf32> to vector<1x256xf32>
    %7 = vector.broadcast %6 : vector<1x256xf32> to vector<6x256xf32>
    %8 = arith.mulf %5, %7 : vector<6x256xf32>
    %9 = arith.addf %4, %8 : vector<6x256xf32>
    %c0_3 = arith.constant 0 : index
    %c0_4 = arith.constant 0 : index
    %10 = vector.load %arg2[%c0_3, %c0_4] : memref<8x256xf32, #tpu.memory_space<vmem>>, vector<6x256xf32>
    %11 = vector.extract_strided_slice %0 {offsets = [2, 0], sizes = [1, 256], strides = [1, 1]} : vector<3x256xf32> to vector<1x256xf32>
    %12 = vector.broadcast %11 : vector<1x256xf32> to vector<6x256xf32>
    %13 = arith.mulf %10, %12 : vector<6x256xf32>
    %14 = arith.addf %9, %13 : vector<6x256xf32>
    %c2_5 = arith.constant 2 : index
    %c0_6 = arith.constant 0 : index
    %15 = vector.load %arg5[%c2_5, %c0_6] : memref<8x256xf32, #tpu.memory_space<vmem>>, vector<6x256xf32>
    tpu.vector_store %arg5[%c2_5, %c0_6], %14 {strides = array<i32>} : memref<8x256xf32, #tpu.memory_space<vmem>>, vector<6x256xf32>,
    %c0_7 = arith.constant 0 : index
    %c0_8 = arith.constant 0 : index
    %c0_9 = arith.constant 0 : index
    %16 = vector.load %arg3[%c0_7, %c0_8, %c0_9] : memref<1x2x256xf32, #tpu.memory_space<vmem>>, vector<1x2x256xf32>
    %17 = vector.shape_cast %16 : vector<1x2x256xf32> to vector<2x256xf32>
    %c0_10 = arith.constant 0 : index
    %c0_11 = arith.constant 0 : index
    %18 = vector.load %arg2[%c0_10, %c0_11] : memref<8x256xf32, #tpu.memory_space<vmem>>, vector<2x256xf32>
    %19 = tpu.concatenate %17, %18 in 0 : vector<2x256xf32>, vector<2x256xf32> -> vector<4x256xf32>
    %20 = vector.extract_strided_slice %19 {offsets = [2, 0], sizes = [2, 256], strides = [1, 1]} : vector<4x256xf32> to vector<2x256xf32>
    %21 = vector.extract_strided_slice %0 {offsets = [0, 0], sizes = [1, 256], strides = [1, 1]} : vector<3x256xf32> to vector<1x256xf32>
    %22 = vector.broadcast %21 : vector<1x256xf32> to vector<2x256xf32>
    %23 = arith.mulf %20, %22 : vector<2x256xf32>
    %24 = vector.extract_strided_slice %19 {offsets = [1, 0], sizes = [2, 256], strides = [1, 1]} : vector<4x256xf32> to vector<2x256xf32>
    %25 = vector.extract_strided_slice %0 {offsets = [1, 0], sizes = [1, 256], strides = [1, 1]} : vector<3x256xf32> to vector<1x256xf32>
    %26 = vector.broadcast %25 : vector<1x256xf32> to vector<2x256xf32>
    %27 = arith.mulf %24, %26 : vector<2x256xf32>
    %28 = arith.addf %23, %27 : vector<2x256xf32>
    %29 = vector.extract_strided_slice %19 {offsets = [0, 0], sizes = [2, 256], strides = [1, 1]} : vector<4x256xf32> to vector<2x256xf32>
    %30 = vector.extract_strided_slice %0 {offsets = [2, 0], sizes = [1, 256], strides = [1, 1]} : vector<3x256xf32> to vector<1x256xf32>
    %31 = vector.broadcast %30 : vector<1x256xf32> to vector<2x256xf32>
    %32 = arith.mulf %29, %31 : vector<2x256xf32>
    %33 = arith.addf %28, %32 : vector<2x256xf32>
    %c0_12 = arith.constant 0 : index
    %c0_13 = arith.constant 0 : index
    %34 = vector.load %arg5[%c0_12, %c0_13] : memref<8x256xf32, #tpu.memory_space<vmem>>, vector<2x256xf32>
    tpu.vector_store %arg5[%c0_12, %c0_13], %33 {strides = array<i32>} : memref<8x256xf32, #tpu.memory_space<vmem>>, vector<2x256xf32>,
    return
  }
  func.func @transform_0(%arg0: i32, %arg1: i32) -> (i32, i32) {
    %c0_i32 = arith.constant 0 : i32
    return %arg1, %arg0 : i32, i32
  }
  func.func @transform_1(%arg0: i32, %arg1: i32) -> (i32, i32, i32) {
    %c0_i32 = arith.constant 0 : i32
    %c0_i32_0 = arith.constant 0 : i32
    return %arg1, %c0_i32, %arg0 : i32, i32, i32
  }
  func.func @transform_2(%arg0: i32, %arg1: i32) -> (i32, i32) {
    %c0_i32 = arith.constant 0 : i32
    %c0_i32_0 = arith.constant 0 : i32
    return %c0_i32, %arg0 : i32, i32
  }
  func.func @transform_3(%arg0: i32, %arg1: i32) -> (i32, i32) {
    %c0_i32 = arith.constant 0 : i32
    return %arg1, %arg0 : i32, i32
  }
}

</mosaic_0001>

<bundles_post_ra>
// kernel: tpu_custom_call.1
= control target key start
LH: loop header
LB: loop body
LE: loop exit
PB: predicated region body
PF: predicated region fallthrough
CT: control target
= control target key end

     0   :  { %8 = vsyncpa [#allocation3], 0  ;;  %s334_s0 = inlined_call_operand.hbm [shape: f32[8,256], index: 0, kind: input, shape index: {}]   ;;  %s335_s1 = inlined_call_operand.hbm [shape: f32[1,2,256], index: 1, kind: input, shape index: {}]   ;;  %s336_s2 = inlined_call_operand.hbm [shape: f32[3,256], index: 2, kind: input, shape index: {}]   ;;  %s337_s3 = inlined_call_operand.hbm [shape: f32[8,256], index: 3, kind: output, shape index: {}]  }
   0x1   :  { %9 = vsyncpa [#allocation6], 0 }
   0x2   :  { %10 = vsyncpa [#allocation4], 0  ;;  %s296_s12 = smov [#allocation5]   ;;  %s297_s14 = smov [#allocation2]  }
   0x3   :  { %s27_s13 = sshll.u32 %s296_s12, 4  ;;  %s17_s15 = sshll.u32 %s297_s14, 4  ;;  %s28_s13 = int_to_ptr.vmem [resolvable:$true] %s27_s13  ;;  %s18_s15 = int_to_ptr.vmem [resolvable:$true] %s17_s15 }
   0x4   :  { %s218_s16 = scalar_lea.vmem %s28_s13, 64  ;;  %p223_p1 = scmp.lt.s32.totalorder %s28_s13, %s28_s13 }
   0x5   :  { %p219_p0 = scmp.ne.s32.totalorder %s28_s13, %s218_s16  ;;  %p224_p2 = scmp.lt.s32.totalorder %s218_s16, %s218_s16 }
   0x7   :  { %p225_p3 = por %p224_p2, %p223_p1 }
   0x9   :  { %p226_p4 = pnand %p225_p3, %p219_p0 }
   0xb   :  { %229 = shalt.err (!%p226_p4)
}
   0xc   :  { %30 = dma.hbm_to_vmem [thread:$0]  %s335_s1, 64, %s28_s13, [#allocation6]  }
   0xd   :  { %s238_s19 = scalar_lea.vmem %s18_s15, 256  ;;  %p243_p6 = scmp.lt.s32.totalorder %s18_s15, %s18_s15 }
   0xe   :  { %p239_p5 = scmp.ne.s32.totalorder %s18_s15, %s238_s19  ;;  %p244_p7 = scmp.lt.s32.totalorder %s238_s19, %s238_s19 }
  0x10   :  { %p245_p8 = por %p244_p7, %p243_p6 }
  0x12   :  { %p246_p9 = pnand %p245_p8, %p239_p5 }
  0x14   :  { %249 = shalt.err (!%p246_p9)
}
  0x15   :  { %20 = dma.hbm_to_vmem [thread:$0]  %s334_s0, 256, %s18_s15, [#allocation3]  }
  0x16   :  { %s298_s22 = smov [#allocation7]  }
  0x17   :  { %s37_s23 = sshll.u32 %s298_s22, 4  ;;  %s38_s23 = int_to_ptr.vmem [resolvable:$true] %s37_s23 }
  0x18   :  { %s258_s24 = scalar_lea.vmem %s38_s23, 128  ;;  %p263_p11 = scmp.lt.s32.totalorder %s38_s23, %s38_s23 }
  0x19   :  { %p259_p10 = scmp.ne.s32.totalorder %s38_s23, %s258_s24  ;;  %p264_p12 = scmp.lt.s32.totalorder %s258_s24, %s258_s24 }
  0x1b   :  { %p265_p13 = por %p264_p12, %p263_p11 }
  0x1d   :  { %p266_p0 = pnand %p265_p13, %p259_p10 }
  0x1f   :  { %269 = shalt.err (!%p266_p0)
}
  0x20   :  { %40 = dma.hbm_to_vmem [thread:$0]  %s336_s2, 128, %s38_s23, [#allocation6]  }
  0x21   :  { %290 = dma.done.wait [#allocation3], 256  }
  0x22   :  { %291 = vsyncadd [#allocation3], 4294967040 }
  0x23   :  { %292 = dma.done.wait [#allocation6], 192  }
  0x24   :  { %293 = vsyncadd [#allocation6], 4294967104  ;;  %v54_v0 = vlaneseq  ;;  %v50_v8 = vld [vmem:[#allocation7] sm:$0x77]  ;;  %v51_v9 = vld [vmem:[#allocation2] sm:$0xfc] }
  0x25   :  { %vm156_vm0 = vcmask 1041408   ;;  %v74_v11 = vld [vmem:[#allocation2] sm:$0x7e]  ;;  %v52_v15 = vld [vmem:[#allocation2 + $0x8] sm:$0xfc]  ;;  %s299_s0 = smov [#allocation8]  }
  0x26   :  { %v55_v1 = vshrl.u32 %v54_v0, 7  ;;  %v104_v13 = vld [vmem:[#allocation2] sm:$0x3f]  ;;  %v75_v17 = vld [vmem:[#allocation2 + $0x8] sm:$0x7e]  ;;  %s195_s2 = sshll.u32 %s299_s0, 4  ;;  %s196_s2 = int_to_ptr.vmem [resolvable:$true] %s195_s2 }
  0x27   :  { %v205_v20 = vld.sshfl [vmem:[#allocation5] sm:$0x33 pattern:$0x76325410]  ;;  %v105_v25 = vld [vmem:[#allocation2 + $0x8] sm:$0x3f]  ;;  %p275_p2 = scmp.lt.s32.totalorder %s196_s2, %s196_s2 }
  0x28   :  { %v56_v2 = vsub.s32 0, %v55_v1  ;;  %v78_v3 = vsub.s32 1, %v55_v1  ;;  %v108_v4 = vsub.s32 2, %v55_v1  ;;  %v60_v5 = vsub.s32 4, %v55_v1  ;;  %v137_v26 = vld [vmem:[#allocation2] sm:$0x3] }
  0x29   :  { %v82_v6 = vsub.s32 5, %v55_v1  ;;  %v112_v7 = vsub.s32 6, %v55_v1  ;;  %v138_v27 = vld [vmem:[#allocation2 + $0x8] sm:$0x3]  ;;  %v147_v30 = vcombine.high %v205_v20, %v205_v20  ;;  %v152_v31 = vrot.slane %v137_v26, 6  ;;  %s270_s26 = scalar_lea.vmem %s196_s2, 256 }
  0x2a   :  { %v57_v10 = vrot.slane %v50_v8, %v56_v2  ;;  %v79_v12 = vrot.slane %v50_v8, %v78_v3  ;;  %v109_v14 = vrot.slane %v50_v8, %v108_v4  ;;  %v61_v16 = vrot.slane %v50_v8, %v60_v5  ;;  %p271_p1 = scmp.ne.s32.totalorder %s196_s2, %s270_s26  ;;  %p276_p3 = scmp.lt.s32.totalorder %s270_s26, %s270_s26 }
  0x2b   :  { %v83_v18 = vrot.slane %v50_v8, %v82_v6  ;;  %v113_v19 = vrot.slane %v50_v8, %v112_v7  ;;  %v157_v38 = vsel %vm156_vm0, %v205_v20, %v152_v31  ;;  %v153_v39 = vrot.slane %v138_v27, 6 }
  0x2c   :  { %v67_v21 = vrot.slane %v57_v10, %v56_v2  ;;  %v89_v22 = vrot.slane %v79_v12, %v78_v3  ;;  %v119_v23 = vrot.slane %v109_v14, %v108_v4  ;;  %v71_v24 = vrot.slane %v61_v16, %v56_v2  ;;  %p277_p4 = por %p276_p3, %p275_p2 }
  0x2d   :  { %v93_v28 = vrot.slane %v83_v18, %v78_v3  ;;  %v123_v29 = vrot.slane %v113_v19, %v108_v4  ;;  %v158_v47 = vsel %vm156_vm0, %v147_v30, %v153_v39 }
  0x2e   :  { %v72_v32 = vmul.f32 %v67_v21, %v51_v9  ;;  %v94_v33 = vmul.f32 %v89_v22, %v74_v11  ;;  %v124_v34 = vmul.f32 %v119_v23, %v104_v13  ;;  %v73_v35 = vmul.f32 %v71_v24, %v52_v15  ;;  %p278_p5 = pnand %p277_p4, %p271_p1 }
  0x2f   :  { %v95_v36 = vmul.f32 %v93_v28, %v75_v17  ;;  %v125_v37 = vmul.f32 %v123_v29, %v105_v25  ;;  %v159_v42 = vmul.f32 %v157_v38, %v67_v21  ;;  %v161_v43 = vmul.f32 %v157_v38, %v89_v22 }
  0x30   :  { %v98_v40 = vrot.slane %v94_v33, 7  ;;  %v128_v41 = vrot.slane %v124_v34, 6  ;;  %v171_v46 = vmul.f32 %v157_v38, %v119_v23  ;;  %v160_v50 = vmul.f32 %v158_v47, %v71_v24 }
  0x31   :  { %v99_v44 = vrot.slane %v95_v36, 7  ;;  %v129_v45 = vrot.slane %v125_v37, 6  ;;  %v165_v49 = vrot.slane %v161_v43, 7  ;;  %v162_v51 = vmul.f32 %v158_v47, %v93_v28 }
  0x32   :  { %v102_v48 = vadd.f32 %v98_v40, %v72_v32  ;;  %v175_v53 = vrot.slane %v171_v46, 6  ;;  %v172_v54 = vmul.f32 %v158_v47, %v123_v29 }
  0x33   :  { %v103_v52 = vadd.f32 %v99_v44, %v73_v35  ;;  %v169_v56 = vadd.f32 %v165_v49, %v159_v42  ;;  %v166_v57 = vrot.slane %v162_v51, 7 }
  0x34   :  { %v132_v55 = vadd.f32 %v128_v41, %v102_v48  ;;  %v176_v59 = vrot.slane %v172_v54, 6 }
  0x35   :  { %v133_v58 = vadd.f32 %v129_v45, %v103_v52  ;;  %v179_v60 = vadd.f32 %v175_v53, %v169_v56  ;;  %v170_v61 = vadd.f32 %v166_v57, %v160_v50 }
  0x36   :  { %134 = vst [vmem:[#allocation8] sm:$0xfc] %v132_v55 }
  0x37   :  { %135 = vst [vmem:[#allocation8 + $0x8] sm:$0xfc] %v133_v58  ;;  %v183_v62 = vrot.slane %v179_v60, 2  ;;  %v180_v63 = vadd.f32 %v176_v59, %v170_v61 }
  0x39   :  { %187 = vst [vmem:[#allocation8] sm:$0x3] %v183_v62  ;;  %v184_v0 = vrot.slane %v180_v63, 2 }
  0x3b   :  { %188 = vst [vmem:[#allocation8 + $0x8] sm:$0x3] %v184_v0 }
  0x3c   :  { %281 = shalt.err (!%p278_p5)
}
  0x3d   :  { %198 = dma.vmem_to_hbm [thread:$0]  %s196_s2, 256, %s337_s3, [#allocation4]  }
  0x3e   :  { %294 = dma.done.wait [#allocation4], 256  }
  0x3f   :  { %295 = vsyncadd [#allocation4], 4294967040 }
  0x40   :  { %202 = vsyncpa [#allocation3], 1 }
  0x41   :  { %203 = vsyncpa [#allocation6], 1 }
  0x42   :  { %204 = vsyncpa [#allocation4], 1 }

</bundles_post_ra>
